<compile_context>
chip_gen: v5e
topology: v5e:2x2
jax: 0.10.0
libtpu: 0.0.40
codegen_flags: <defaults>
</compile_context>

<pallas_src>
import math
import jax
import jax.numpy as jnp
from jax.experimental import pallas as pl
from jax.experimental.pallas import tpu as pltpu


def _mha_kernel(n_heads: int, q_tile: int, n_embed: int):
    H = n_heads
    C = n_embed
    hs = C // H
    scale = C ** (-0.5)  # reference scales by n_embed**-0.5 (not head_size)

    def kernel(xq_ref, xkv_ref, wqkv_ref, wp_ref, bp_ref, o_ref):
        qi = pl.program_id(1)
        x_dtype = xq_ref.dtype
        Tq = xq_ref.shape[0]
        Tk = xkv_ref.shape[0]

        # ---- fused projections (native-dtype MXU operands, f32 accumulation) ----
        w_q = wqkv_ref[:, 0:C]
        w_kv = wqkv_ref[:, C:3 * C]
        q = jnp.dot(xq_ref[...], w_q, preferred_element_type=jnp.float32)
        q = (q * scale).astype(x_dtype)  # fold softmax scale into q once
        kv = jnp.dot(xkv_ref[...], w_kv,
                     preferred_element_type=jnp.float32).astype(x_dtype)
        k = kv[:, 0:C]
        v = kv[:, C:2 * C]

        # ---- causal mask (hoisted out of the head loop; global query offset) ----
        row = qi * q_tile + jax.lax.broadcasted_iota(jnp.int32, (Tq, Tk), 0)
        col = jax.lax.broadcasted_iota(jnp.int32, (Tq, Tk), 1)
        causal = col <= row

        # ---- per-head attention: no (H,T,T) tensor, no transposes ----
        outs = []
        for h in range(H):
            sl = slice(h * hs, (h + 1) * hs)
            qh, kh, vh = q[:, sl], k[:, sl], v[:, sl]
            # q @ k^T via dot_general (contract last dims) -> (Tq, Tk), f32 acc
            s = jax.lax.dot_general(qh, kh, (((1,), (1,)), ((), ())),
                                    preferred_element_type=jnp.float32)
            s = jnp.where(causal, s, -jnp.inf)
            m = jnp.max(s, axis=-1, keepdims=True)
            p = jnp.exp(s - m)
            l = jnp.sum(p, axis=-1, keepdims=True)
            inv_l = pl.reciprocal(l, approx=True)
            # attention dropout: identity (eval mode)
            o_h = jnp.dot(p.astype(x_dtype), vh,
                          preferred_element_type=jnp.float32)
            outs.append(o_h * inv_l)  # deferred softmax normalization

        out = jnp.concatenate(outs, axis=-1).astype(x_dtype)  # (Tq, C)

        # ---- output projection (bias=True) ----
        proj = jnp.dot(out, wp_ref[...], preferred_element_type=jnp.float32)
        proj = proj + bp_ref[...].astype(jnp.float32)
        # output dropout: identity (eval mode)
        o_ref[...] = proj.astype(o_ref.dtype)

    return kernel


def _pick_q_tile(T: int) -> int:
    """Largest convenient query tile: full T for short sequences, else 128."""
    if T > 128 and T % 128 == 0:
        return 128
    return T


def multi_head_attention_dropout(x, wq, wk, wv, wp, bp, *, n_heads):
    """x: (B, T, C); wq/wk/wv/wp: (C, C) pre-transposed (x @ W); bp: (C,)."""
    B, T, C = x.shape
    assert C % n_heads == 0
    Tq = _pick_q_tile(T)
    n_q = T // Tq

    # Fuse the three projection weights into a single (C, 3C) matrix.
    wqkv = jnp.concatenate([wq, wk, wv], axis=1)
    bp2 = bp.reshape(1, C)

    kernel = _mha_kernel(n_heads, Tq, C)

    return pl.pallas_call(
        kernel,
        out_shape=jax.ShapeDtypeStruct((B, T, C), x.dtype),
        grid_spec=pltpu.PrefetchScalarGridSpec(
            num_scalar_prefetch=0,
            grid=(B, n_q),
            in_specs=[
                pl.BlockSpec((None, Tq, C), lambda b, q: (b, q, 0)),  # x (query rows)
                pl.BlockSpec((None, T, C), lambda b, q: (b, 0, 0)),   # x (kv rows, full T)
                pl.BlockSpec((C, 3 * C), lambda b, q: (0, 0)),        # fused Wqkv
                pl.BlockSpec((C, C), lambda b, q: (0, 0)),            # Wproj
                pl.BlockSpec((1, C), lambda b, q: (0, 0)),            # bproj
            ],
            out_specs=pl.BlockSpec((None, Tq, C), lambda b, q: (b, q, 0)),
        ),
        compiler_params=pltpu.CompilerParams(
            dimension_semantics=("parallel", "parallel"),
            vmem_limit_bytes=64 * 1024 * 1024,
        ),
    )(x, x, wqkv, wp, bp2)


def _reference(x, wq, wk, wv, wp, bp, n_heads):
    """Pure-JAX replica of the PyTorch forward (eval mode)."""
    B, T, C = x.shape
    hs = C // n_heads
    q = x @ wq
    k = x @ wk
    v = x @ wv
    qh = q.reshape(B, T, n_heads, hs).transpose(0, 2, 1, 3)
    kh = k.reshape(B, T, n_heads, hs).transpose(0, 2, 1, 3)
    vh = v.reshape(B, T, n_heads, hs).transpose(0, 2, 1, 3)
    wei = jnp.einsum("bhtd,bhsd->bhts", qh, kh) * (C ** -0.5)
    mask = jnp.tril(jnp.ones((T, T), dtype=bool))
    wei = jnp.where(mask[None, None], wei, -jnp.inf)
    wei = jax.nn.softmax(wei, axis=-1)
    out = jnp.einsum("bhts,bhsd->bhtd", wei, vh)
    out = out.transpose(0, 2, 1, 3).reshape(B, T, C)
    return out @ wp + bp[None, None, :]


if __name__ == "__main__":
    def run_case(B, T, C, H, tag):
        key = jax.random.fold_in(jax.random.PRNGKey(0), tag)
        kx, kq, kk, kv, kp, kb = jax.random.split(key, 6)
        s = 1.0 / math.sqrt(C)
        x = jax.random.normal(kx, (B, T, C), dtype=jnp.float32)
        wq = jax.random.normal(kq, (C, C), dtype=jnp.float32) * s
        wk = jax.random.normal(kk, (C, C), dtype=jnp.float32) * s
        wv = jax.random.normal(kv, (C, C), dtype=jnp.float32) * s
        wp = jax.random.normal(kp, (C, C), dtype=jnp.float32) * s
        bp = jax.random.normal(kb, (C,), dtype=jnp.float32) * s

        out = jax.block_until_ready(
            multi_head_attention_dropout(x, wq, wk, wv, wp, bp, n_heads=H))
        ref = _reference(x, wq, wk, wv, wp, bp, H)
        assert out.shape == (B, T, C)
        err = float(jnp.max(jnp.abs(out - ref)))
        # approx reciprocal (EUP) => slightly looser tolerance than exact divide
        assert jnp.allclose(out, ref, atol=2e-3, rtol=2e-3), (
            f"mismatch (B={B},T={T},C={C},H={H}): max abs err {err}")

    # module-consistent small config: n_embed=32, n_heads=4 (head_size=8), T=8
    run_case(B=2, T=8, C=32, H=4, tag=0)
    # exercise the tiled-query grid path (Tq=128, grid=(2, 2))
    run_case(B=2, T=256, C=128, H=4, tag=1)

    print("KERNEL_OK")
</pallas_src>

<mosaic_0001>
module attributes {stable_mosaic.version = 11 : i64} {
  func.func @kernel(%arg0: i32, %arg1: i32, %arg2: memref<1x8x32xf32, #tpu.memory_space<vmem>>, %arg3: memref<1x8x32xf32, #tpu.memory_space<vmem>>, %arg4: memref<32x96xf32, #tpu.memory_space<vmem>>, %arg5: memref<32x32xf32, #tpu.memory_space<vmem>>, %arg6: memref<1x32xf32, #tpu.memory_space<vmem>>, %arg7: memref<1x8x32xf32, #tpu.memory_space<vmem>>) attributes {dimension_semantics = [#tpu.dimension_semantics<parallel>, #tpu.dimension_semantics<parallel>], iteration_bounds = array<i64: 2, 1>, scalar_prefetch = 0 : i64, scratch_operands = 0 : i64, tpu.core_type = #tpu.core_type<tc>, window_params = [{transform_indices = @transform_0, window_bounds = array<i64: 1, 8, 32>}, {transform_indices = @transform_1, window_bounds = array<i64: 1, 8, 32>}, {pipeline_mode = #tpu.pipeline_mode<synchronous>, transform_indices = @transform_2, window_bounds = array<i64: 32, 96>}, {pipeline_mode = #tpu.pipeline_mode<synchronous>, transform_indices = @transform_3, window_bounds = array<i64: 32, 32>}, {pipeline_mode = #tpu.pipeline_mode<synchronous>, transform_indices = @transform_4, window_bounds = array<i64: 1, 32>}, {transform_indices = @transform_5, window_bounds = array<i64: 1, 8, 32>}]} {
    %c0 = arith.constant 0 : index
    %c0_0 = arith.constant 0 : index
    %0 = vector.load %arg4[%c0, %c0_0] : memref<32x96xf32, #tpu.memory_space<vmem>>, vector<32x32xf32>
    %c0_1 = arith.constant 0 : index
    %c32 = arith.constant 32 : index
    %1 = vector.load %arg4[%c0_1, %c32] : memref<32x96xf32, #tpu.memory_space<vmem>>, vector<32x64xf32>
    %c0_2 = arith.constant 0 : index
    %c0_3 = arith.constant 0 : index
    %c0_4 = arith.constant 0 : index
    %2 = vector.load %arg2[%c0_2, %c0_3, %c0_4] : memref<1x8x32xf32, #tpu.memory_space<vmem>>, vector<1x8x32xf32>
    %3 = vector.shape_cast %2 : vector<1x8x32xf32> to vector<8x32xf32>
    %cst = arith.constant dense<0.000000e+00> : vector<8x32xf32>
    %4 = tpu.matmul %3, %0, %cst {dimension_numbers = #tpu.dot_dimension_numbers<[1], [0], [0], [1], [0, 0, 1, 1], [], []>} : vector<8x32xf32>, vector<32x32xf32>, vector<8x32xf32> -> vector<8x32xf32>
    %cst_5 = arith.constant 0.176776692 : f32
    %5 = vector.broadcast %cst_5 : f32 to vector<8x32xf32>
    %6 = arith.mulf %4, %5 : vector<8x32xf32>
    %c0_6 = arith.constant 0 : index
    %c0_7 = arith.constant 0 : index
    %c0_8 = arith.constant 0 : index
    %7 = vector.load %arg3[%c0_6, %c0_7, %c0_8] : memref<1x8x32xf32, #tpu.memory_space<vmem>>, vector<1x8x32xf32>
    %8 = vector.shape_cast %7 : vector<1x8x32xf32> to vector<8x32xf32>
    %cst_9 = arith.constant dense<0.000000e+00> : vector<8x64xf32>
    %9 = tpu.matmul %8, %1, %cst_9 {dimension_numbers = #tpu.dot_dimension_numbers<[1], [0], [0], [1], [0, 0, 1, 1], [], []>} : vector<8x32xf32>, vector<32x64xf32>, vector<8x64xf32> -> vector<8x64xf32>
    %10 = vector.extract_strided_slice %9 {offsets = [0, 0], sizes = [8, 32], strides = [1, 1]} : vector<8x64xf32> to vector<8x32xf32>
    %11 = vector.extract_strided_slice %9 {offsets = [0, 32], sizes = [8, 32], strides = [1, 1]} : vector<8x64xf32> to vector<8x32xf32>
    %c8_i32 = arith.constant 8 : i32
    %12 = arith.muli %arg1, %c8_i32 : i32
    %13 = tpu.iota {dimensions = array<i32: 0>} : vector<8x8xi32>
    %14 = vector.broadcast %12 : i32 to vector<8x8xi32>
    %15 = arith.addi %14, %13 : vector<8x8xi32>
    %16 = tpu.iota {dimensions = array<i32: 1>} : vector<8x8xi32>
    %17 = arith.cmpi sle, %16, %15 : vector<8x8xi32>
    %18 = vector.extract_strided_slice %6 {offsets = [0, 0], sizes = [8, 8], strides = [1, 1]} : vector<8x32xf32> to vector<8x8xf32>
    %19 = vector.extract_strided_slice %10 {offsets = [0, 0], sizes = [8, 8], strides = [1, 1]} : vector<8x32xf32> to vector<8x8xf32>
    %20 = vector.extract_strided_slice %11 {offsets = [0, 0], sizes = [8, 8], strides = [1, 1]} : vector<8x32xf32> to vector<8x8xf32>
    %cst_10 = arith.constant dense<0.000000e+00> : vector<8x8xf32>
    %21 = tpu.matmul %18, %19, %cst_10 {dimension_numbers = #tpu.dot_dimension_numbers<[1], [1], [0], [0], [0, 0, 1, 0], [], []>} : vector<8x8xf32>, vector<8x8xf32>, vector<8x8xf32> -> vector<8x8xf32>
    %cst_11 = arith.constant 0xFF800000 : f32
    %22 = vector.broadcast %cst_11 : f32 to vector<8x8xf32>
    %23 = arith.select %17, %21, %22 : vector<8x8xi1>, vector<8x8xf32>
    %cst_12 = arith.constant dense<0xFF800000> : vector<8xf32>
    %24 = vector.multi_reduction <maximumf>, %23, %cst_12 [1] : vector<8x8xf32> to vector<8xf32>
    %25 = vector.shape_cast %24 : vector<8xf32> to vector<8x1xf32>
    %26 = vector.broadcast %25 : vector<8x1xf32> to vector<8x8xf32>
    %27 = arith.subf %23, %26 : vector<8x8xf32>
    %28 = math.exp %27 : vector<8x8xf32>
    %cst_13 = arith.constant dense<0.000000e+00> : vector<8xf32>
    %29 = vector.multi_reduction <add>, %28, %cst_13 [1] : vector<8x8xf32> to vector<8xf32>
    %30 = vector.shape_cast %29 : vector<8xf32> to vector<8x1xf32>
    %31 = tpu.reciprocal %30 {approx = true} : vector<8x1xf32> -> vector<8x1xf32>
    %cst_14 = arith.constant dense<0.000000e+00> : vector<8x8xf32>
    %32 = tpu.matmul %28, %20, %cst_14 {dimension_numbers = #tpu.dot_dimension_numbers<[1], [0], [0], [1], [0, 0, 1, 1], [], []>} : vector<8x8xf32>, vector<8x8xf32>, vector<8x8xf32> -> vector<8x8xf32>
    %33 = vector.broadcast %31 : vector<8x1xf32> to vector<8x8xf32>
    %34 = arith.mulf %32, %33 : vector<8x8xf32>
    %35 = vector.extract_strided_slice %6 {offsets = [0, 8], sizes = [8, 8], strides = [1, 1]} : vector<8x32xf32> to vector<8x8xf32>
    %36 = vector.extract_strided_slice %10 {offsets = [0, 8], sizes = [8, 8], strides = [1, 1]} : vector<8x32xf32> to vector<8x8xf32>
    %37 = vector.extract_strided_slice %11 {offsets = [0, 8], sizes = [8, 8], strides = [1, 1]} : vector<8x32xf32> to vector<8x8xf32>
    %cst_15 = arith.constant dense<0.000000e+00> : vector<8x8xf32>
    %38 = tpu.matmul %35, %36, %cst_15 {dimension_numbers = #tpu.dot_dimension_numbers<[1], [1], [0], [0], [0, 0, 1, 0], [], []>} : vector<8x8xf32>, vector<8x8xf32>, vector<8x8xf32> -> vector<8x8xf32>
    %cst_16 = arith.constant 0xFF800000 : f32
    %39 = vector.broadcast %cst_16 : f32 to vector<8x8xf32>
    %40 = arith.select %17, %38, %39 : vector<8x8xi1>, vector<8x8xf32>
    %cst_17 = arith.constant dense<0xFF800000> : vector<8xf32>
    %41 = vector.multi_reduction <maximumf>, %40, %cst_17 [1] : vector<8x8xf32> to vector<8xf32>
    %42 = vector.shape_cast %41 : vector<8xf32> to vector<8x1xf32>
    %43 = vector.broadcast %42 : vector<8x1xf32> to vector<8x8xf32>
    %44 = arith.subf %40, %43 : vector<8x8xf32>
    %45 = math.exp %44 : vector<8x8xf32>
    %cst_18 = arith.constant dense<0.000000e+00> : vector<8xf32>
    %46 = vector.multi_reduction <add>, %45, %cst_18 [1] : vector<8x8xf32> to vector<8xf32>
    %47 = vector.shape_cast %46 : vector<8xf32> to vector<8x1xf32>
    %48 = tpu.reciprocal %47 {approx = true} : vector<8x1xf32> -> vector<8x1xf32>
    %cst_19 = arith.constant dense<0.000000e+00> : vector<8x8xf32>
    %49 = tpu.matmul %45, %37, %cst_19 {dimension_numbers = #tpu.dot_dimension_numbers<[1], [0], [0], [1], [0, 0, 1, 1], [], []>} : vector<8x8xf32>, vector<8x8xf32>, vector<8x8xf32> -> vector<8x8xf32>
    %50 = vector.broadcast %48 : vector<8x1xf32> to vector<8x8xf32>
    %51 = arith.mulf %49, %50 : vector<8x8xf32>
    %52 = vector.extract_strided_slice %6 {offsets = [0, 16], sizes = [8, 8], strides = [1, 1]} : vector<8x32xf32> to vector<8x8xf32>
    %53 = vector.extract_strided_slice %10 {offsets = [0, 16], sizes = [8, 8], strides = [1, 1]} : vector<8x32xf32> to vector<8x8xf32>
    %54 = vector.extract_strided_slice %11 {offsets = [0, 16], sizes = [8, 8], strides = [1, 1]} : vector<8x32xf32> to vector<8x8xf32>
    %cst_20 = arith.constant dense<0.000000e+00> : vector<8x8xf32>
    %55 = tpu.matmul %52, %53, %cst_20 {dimension_numbers = #tpu.dot_dimension_numbers<[1], [1], [0], [0], [0, 0, 1, 0], [], []>} : vector<8x8xf32>, vector<8x8xf32>, vector<8x8xf32> -> vector<8x8xf32>
    %cst_21 = arith.constant 0xFF800000 : f32
    %56 = vector.broadcast %cst_21 : f32 to vector<8x8xf32>
    %57 = arith.select %17, %55, %56 : vector<8x8xi1>, vector<8x8xf32>
    %cst_22 = arith.constant dense<0xFF800000> : vector<8xf32>
    %58 = vector.multi_reduction <maximumf>, %57, %cst_22 [1] : vector<8x8xf32> to vector<8xf32>
    %59 = vector.shape_cast %58 : vector<8xf32> to vector<8x1xf32>
    %60 = vector.broadcast %59 : vector<8x1xf32> to vector<8x8xf32>
    %61 = arith.subf %57, %60 : vector<8x8xf32>
    %62 = math.exp %61 : vector<8x8xf32>
    %cst_23 = arith.constant dense<0.000000e+00> : vector<8xf32>
    %63 = vector.multi_reduction <add>, %62, %cst_23 [1] : vector<8x8xf32> to vector<8xf32>
    %64 = vector.shape_cast %63 : vector<8xf32> to vector<8x1xf32>
    %65 = tpu.reciprocal %64 {approx = true} : vector<8x1xf32> -> vector<8x1xf32>
    %cst_24 = arith.constant dense<0.000000e+00> : vector<8x8xf32>
    %66 = tpu.matmul %62, %54, %cst_24 {dimension_numbers = #tpu.dot_dimension_numbers<[1], [0], [0], [1], [0, 0, 1, 1], [], []>} : vector<8x8xf32>, vector<8x8xf32>, vector<8x8xf32> -> vector<8x8xf32>
    %67 = vector.broadcast %65 : vector<8x1xf32> to vector<8x8xf32>
    %68 = arith.mulf %66, %67 : vector<8x8xf32>
    %69 = vector.extract_strided_slice %6 {offsets = [0, 24], sizes = [8, 8], strides = [1, 1]} : vector<8x32xf32> to vector<8x8xf32>
    %70 = vector.extract_strided_slice %10 {offsets = [0, 24], sizes = [8, 8], strides = [1, 1]} : vector<8x32xf32> to vector<8x8xf32>
    %71 = vector.extract_strided_slice %11 {offsets = [0, 24], sizes = [8, 8], strides = [1, 1]} : vector<8x32xf32> to vector<8x8xf32>
    %cst_25 = arith.constant dense<0.000000e+00> : vector<8x8xf32>
    %72 = tpu.matmul %69, %70, %cst_25 {dimension_numbers = #tpu.dot_dimension_numbers<[1], [1], [0], [0], [0, 0, 1, 0], [], []>} : vector<8x8xf32>, vector<8x8xf32>, vector<8x8xf32> -> vector<8x8xf32>
    %cst_26 = arith.constant 0xFF800000 : f32
    %73 = vector.broadcast %cst_26 : f32 to vector<8x8xf32>
    %74 = arith.select %17, %72, %73 : vector<8x8xi1>, vector<8x8xf32>
    %cst_27 = arith.constant dense<0xFF800000> : vector<8xf32>
    %75 = vector.multi_reduction <maximumf>, %74, %cst_27 [1] : vector<8x8xf32> to vector<8xf32>
    %76 = vector.shape_cast %75 : vector<8xf32> to vector<8x1xf32>
    %77 = vector.broadcast %76 : vector<8x1xf32> to vector<8x8xf32>
    %78 = arith.subf %74, %77 : vector<8x8xf32>
    %79 = math.exp %78 : vector<8x8xf32>
    %cst_28 = arith.constant dense<0.000000e+00> : vector<8xf32>
    %80 = vector.multi_reduction <add>, %79, %cst_28 [1] : vector<8x8xf32> to vector<8xf32>
    %81 = vector.shape_cast %80 : vector<8xf32> to vector<8x1xf32>
    %82 = tpu.reciprocal %81 {approx = true} : vector<8x1xf32> -> vector<8x1xf32>
    %cst_29 = arith.constant dense<0.000000e+00> : vector<8x8xf32>
    %83 = tpu.matmul %79, %71, %cst_29 {dimension_numbers = #tpu.dot_dimension_numbers<[1], [0], [0], [1], [0, 0, 1, 1], [], []>} : vector<8x8xf32>, vector<8x8xf32>, vector<8x8xf32> -> vector<8x8xf32>
    %84 = vector.broadcast %82 : vector<8x1xf32> to vector<8x8xf32>
    %85 = arith.mulf %83, %84 : vector<8x8xf32>
    %86 = tpu.concatenate %34, %51, %68, %85 in 1 : vector<8x8xf32>, vector<8x8xf32>, vector<8x8xf32>, vector<8x8xf32> -> vector<8x32xf32>
    %c0_30 = arith.constant 0 : index
    %c0_31 = arith.constant 0 : index
    %87 = vector.load %arg5[%c0_30, %c0_31] : memref<32x32xf32, #tpu.memory_space<vmem>>, vector<32x32xf32>
    %cst_32 = arith.constant dense<0.000000e+00> : vector<8x32xf32>
    %88 = tpu.matmul %86, %87, %cst_32 {dimension_numbers = #tpu.dot_dimension_numbers<[1], [0], [0], [1], [0, 0, 1, 1], [], []>} : vector<8x32xf32>, vector<32x32xf32>, vector<8x32xf32> -> vector<8x32xf32>
    %c0_33 = arith.constant 0 : index
    %c0_34 = arith.constant 0 : index
    %89 = vector.load %arg6[%c0_33, %c0_34] : memref<1x32xf32, #tpu.memory_space<vmem>>, vector<1x32xf32>
    %90 = vector.broadcast %89 : vector<1x32xf32> to vector<8x32xf32>
    %91 = arith.addf %88, %90 : vector<8x32xf32>
    %c0_35 = arith.constant 0 : index
    %c0_36 = arith.constant 0 : index
    %c0_37 = arith.constant 0 : index
    %92 = vector.load %arg7[%c0_35, %c0_36, %c0_37] : memref<1x8x32xf32, #tpu.memory_space<vmem>>, vector<1x8x32xf32>
    %93 = vector.shape_cast %92 : vector<1x8x32xf32> to vector<8x32xf32>
    %94 = vector.shape_cast %91 : vector<8x32xf32> to vector<1x8x32xf32>
    tpu.vector_store %arg7[%c0_35, %c0_36, %c0_37], %94 {strides = array<i32>} : memref<1x8x32xf32, #tpu.memory_space<vmem>>, vector<1x8x32xf32>,
    return
  }
  func.func @transform_0(%arg0: i32, %arg1: i32) -> (i32, i32, i32) {
    %c0_i32 = arith.constant 0 : i32
    %c0_i32_0 = arith.constant 0 : i32
    return %arg0, %arg1, %c0_i32 : i32, i32, i32
  }
  func.func @transform_1(%arg0: i32, %arg1: i32) -> (i32, i32, i32) {
    %c0_i32 = arith.constant 0 : i32
    %c0_i32_0 = arith.constant 0 : i32
    %c0_i32_1 = arith.constant 0 : i32
    return %arg0, %c0_i32, %c0_i32_0 : i32, i32, i32
  }
  func.func @transform_2(%arg0: i32, %arg1: i32) -> (i32, i32) {
    %c0_i32 = arith.constant 0 : i32
    %c0_i32_0 = arith.constant 0 : i32
    %c0_i32_1 = arith.constant 0 : i32
    return %c0_i32, %c0_i32_0 : i32, i32
  }
  func.func @transform_3(%arg0: i32, %arg1: i32) -> (i32, i32) {
    %c0_i32 = arith.constant 0 : i32
    %c0_i32_0 = arith.constant 0 : i32
    %c0_i32_1 = arith.constant 0 : i32
    return %c0_i32, %c0_i32_0 : i32, i32
  }
  func.func @transform_4(%arg0: i32, %arg1: i32) -> (i32, i32) {
    %c0_i32 = arith.constant 0 : i32
    %c0_i32_0 = arith.constant 0 : i32
    %c0_i32_1 = arith.constant 0 : i32
    return %c0_i32, %c0_i32_0 : i32, i32
  }
  func.func @transform_5(%arg0: i32, %arg1: i32) -> (i32, i32, i32) {
    %c0_i32 = arith.constant 0 : i32
    %c0_i32_0 = arith.constant 0 : i32
    return %arg0, %arg1, %c0_i32 : i32, i32, i32
  }
}

</mosaic_0001>

<bundles_post_ra>
// kernel: tpu_custom_call.1
= control target key start
LH: loop header
LB: loop body
LE: loop exit
PB: predicated region body
PF: predicated region fallthrough
CT: control target
= control target key end

     0   :  { %s1496_s0 = inlined_call_operand.hbm [shape: f32[2,8,32], index: 0, kind: input, shape index: {}]   ;;  %s1497_s1 = inlined_call_operand.hbm [shape: f32[2,8,32], index: 1, kind: input, shape index: {}]   ;;  %s1498_s2 = inlined_call_operand.hbm [shape: f32[32,96], index: 2, kind: input, shape index: {}]   ;;  %s1499_s3 = inlined_call_operand.hbm [shape: f32[32,32], index: 3, kind: input, shape index: {}]   ;;  %s1500_s4 = inlined_call_operand.vmem [shape: f32[1,32], index: 4, kind: input, shape index: {}]   ;;  %s1501_s5 = inlined_call_operand.hbm [shape: f32[2,8,32], index: 5, kind: output, shape index: {}]  }
   0x1   :  { %1505 = sst [smem:[#allocation20_spill]] %s1498_s2 }
   0x2   :  { %1506 = sst [smem:[#allocation21_spill]] %s1499_s3 }
   0x3   :  { %10 = vsyncpa [#allocation3], 0 }
   0x4   :  { %12 = vsyncpa [#allocation3 + $0x1], 0 }
   0x5   :  { %13 = vsyncpa [#allocation6], 0 }
   0x6   :  { %15 = vsyncpa [#allocation6 + $0x1], 0 }
   0x7   :  { %16 = vsyncpa [#allocation9], 0 }
   0x8   :  { %17 = vsyncpa [#allocation4], 0 }
   0x9   :  { %19 = vsyncpa [#allocation4 + $0x1], 0  ;;  %s1282_s18 = smov 0   ;;  %s1284_s19 = smov 0  }
   0xa   :  { %s1286_s20 = smov 0   ;;  %s1288_s21 = smov 0  }
   0xb   :  { %s1290_s22 = smov 0   ;;  %s1292_s23 = smov 0  }
   0xc LB: > { %1507 = sst [smem:[#allocation16_spill]] %s1224_s20  ;;  %s1313_s24 = sadd.s32 4294967295, %s1236_s23   ;;  %s1236_s23 = sphi %s1292_s23, %s25_s23   ;;  %s1232_s22 = sphi %s1290_s22, %s1521_s22   ;;  %s1228_s21 = sphi %s1288_s21, %s1520_s21   ;;  %s1224_s20 = sphi %s1286_s20, %s1519_s20   ;;  %s1220_s19 = sphi %s1284_s19, %s1523_s19   ;;  %s1216_s18 = sphi %s1282_s18, %s1522_s18  }
   0xd   : > { %1508 = sst [smem:[#allocation17_spill]] %s1232_s22  ;;  %p862_p0 = scmp.ge.s32.totalorder %s1236_s23, 1 }
   0xe   : > { %p60_p1 = scmp.eq.s32.totalorder %s1313_s24, 0  ;;  %p187_p2 = scmp.lt.s32.totalorder %s1236_s23, 3 }
   0xf   : > { %s1509_s2 = sld [smem:[#allocation20_spill]]  ;;  %s1238_s29 = smov [#allocation7]  }
  0x10   : > { %p1321_p3 = pnand %p862_p0, %p187_p2  ;;  %s200_s30 = sshll.u32 %s1238_s29, 4  ;;  %s201_s30 = int_to_ptr.vmem [resolvable:$true] %s200_s30 }
  0x11   : > { %p865_p6 = scmp.ge.s32.totalorder %s1236_s23, 2  ;;  %s1511_s3 = sld [smem:[#allocation21_spill]] }
  0x12   : > { %p909_p4 = pneg %p1321_p3  ;;  %s1239_s9 = smov 128  }
  0x13   : > { %s1240_s10 = smov 8   ;;  %s1241_s11 = smov [#allocation8]  }
  0x14   : > { %p910_p5 = pnand %p909_p4, %p60_p1  ;;  %s214_s12 = sshll.u32 %s1241_s11, 4  ;;  %s215_s12 = int_to_ptr.vmem [resolvable:$true] %s214_s12 }
  0x15   : > { %s198_s27 = sshll.u32 %s1509_s2, 4  ;;  %s861_s13 = sadd.s32 4294967294, %s1236_s23   ;;  %s199_s27 = int_to_ptr.hbm [resolvable:$true] %s198_s27 }
  0x16   : > { %912 = dma.hbm_to_vmem [thread:$0]  (!%p910_p5), %s199_s27, 512, %s201_s30, [#allocation6], %s1239_s9, %s1239_s9, %s1240_s10  }
  0x17   : > { %s212_s8 = sshll.u32 %s1511_s3, 4  ;;  %s37_s14 = sadd.s32 1, %s1232_s22  ;;  %s213_s8 = int_to_ptr.hbm [resolvable:$true] %s212_s8 }
  0x18   : > { %915 = dma.hbm_to_vmem [thread:$0]  (!%p910_p5), %s213_s8, 512, %s215_s12, [#allocation9], %s1239_s9, %s1239_s9, %s1240_s10  }
  0x19   : > { %p39_p7 = scmp.ge.s32.totalorder %s37_s14, 2  ;;  %s46_s15 = sadd.s32 1, %s1224_s20 }
  0x1a   : > { %p53_p8 = scmp.ne.s32.totalorder %s1224_s20, %s1220_s19  ;;  %p54_p9 = scmp.eq.s32.totalorder %s1236_s23, 0 }
  0x1b   : > { %s1525_s14 = smov (%p39_p7, %s37_s14), 0  ;;  %p59_p11 = scmp.ne.s32.totalorder %s1220_s19, %s1216_s18 }
  0x1c   : > { %1512 = sst [smem:[#allocation18_spill]] %s1525_s14  ;;  %p1341_p10 = por %p54_p9, %p53_p8 }
  0x1d   : > { %s41_s17 = ssub.s32 %s1232_s22, %s1525_s14  ;;  %p174_p12 = scmp.eq.s32.totalorder %s1313_s24, 1 }
  0x1e   : > { %p44_p13 = scmp.eq.s32.totalorder %s41_s17, 0  ;;  %p1352_p0 = por %p60_p1, %p59_p11 }
  0x1f   : > { %p1356_p2 = por %p174_p12, %p53_p8  ;;  %p180_p4 = scmp.eq.s32.totalorder %s861_s13, 1 }
  0x20   : > { %s1361_s27 = scalar_select %p44_p13, %s1224_s20, %s46_s15  }
  0x21   : > { %p1363_p5 = por %p180_p4, %p59_p11  ;;  %p929_p7 = scmp.lt.s32.totalorder %s1236_s23, 2 }
  0x22   : > { %1516 = sst [smem:[#allocation19_spill]] %s1361_s27  ;;  %s231_s30 = sand.u32 1, %s1224_s20  }
  0x23   : > { %s867_s6 = sshll.u32 %s1232_s22, 3  ;;  %s866_s7 = sshll.u32 %s231_s30, 3 }
  0x24   : > { %s240_s10 = scalar_lea.hbm %s1496_s0, %s867_s6  ;;  %s235_s12 = scalar_lea.vmem [#allocation2], %s866_s7 }
  0x25   : > { %s242_s11 = sshll.u32 %s240_s10, 4  ;;  %s244_s17 = sshll.u32 %s235_s12, 4  ;;  %s243_s11 = int_to_ptr.hbm [resolvable:$true] %s242_s11  ;;  %s245_s17 = int_to_ptr.vmem [resolvable:$true] %s244_s17 }
  0x26   : > { %p917_p8 = pnand %p929_p7, %p1341_p10  ;;  %s259_s2 = scalar_lea.hbm %s1497_s1, %s867_s6 }
  0x27   : > { %s251_s3 = sand.u32 1, %s1236_s23   ;;  %s232_s14 = scalar_lea.sflag [#allocation3], %s231_s30 }
  0x28   : > { %919 = dma.hbm_to_vmem [thread:$0]  (!%p917_p8), %s243_s11, 128, %s245_s17, %s232_s14  }
  0x29   : > { %s261_s22 = sshll.u32 %s259_s2, 4  ;;  %s255_s27 = scalar_lea.vmem [#allocation5], %s866_s7  ;;  %s262_s22 = int_to_ptr.hbm [resolvable:$true] %s261_s22 }
  0x2a   : > { %s263_s20 = sshll.u32 %s255_s27, 4  ;;  %s252_s8 = scalar_lea.sflag [#allocation6], %s251_s3  ;;  %s264_s20 = int_to_ptr.vmem [resolvable:$true] %s263_s20 }
  0x2b   : > { %922 = dma.hbm_to_vmem [thread:$0]  (!%p917_p8), %s262_s22, 128, %s264_s20, %s252_s8  }
  0x2c   : > { %272 = sbr.rel (%p1321_p3) target bundleno = 1262 (0x4ee), region = 40  ;;  %s1382_s16 = sand.u32 (!%p1321_p3), 1, %s1220_s19  }
  0x2d   : > { %s1385_s6 = sshll.u32 (!%p1321_p3), %s1382_s16, 3  ;;  %s275_s14 = scalar_lea.sflag (!%p1321_p3), [#allocation3], %s1382_s16 }
  0x2e   : > { %s278_s2 = scalar_lea.vmem (!%p1321_p3), [#allocation2], %s1385_s6 }
  0x31   : > { %1195 = dma.done.wait (%p1352_p0), %s275_s14, 128  }
  0x32   : > { %1197 = vsyncadd (%p1352_p0), %s275_s14, 4294967168  ;;  %s284_s3 = sand.u32 1, %s1313_s24   ;;  %s288_s22 = scalar_lea.vmem [#allocation5], %s1385_s6 }
  0x33   : > { %s285_s20 = scalar_lea.sflag [#allocation6], %s284_s3 }
  0x34   : > { %1199 = dma.done.wait (%p1352_p0), %s285_s20, 128  }
  0x35   : > { %1201 = vsyncadd (%p1352_p0), %s285_s20, 4294967168 }
  0x36   : > { %1203 = dma.done.wait (%p60_p1), [#allocation6], 512  }
  0x37   : > { %1205 = vsyncadd (%p60_p1), [#allocation6], 4294966784 }
  0x38   : > { %1207 = dma.done.wait (%p60_p1), [#allocation9], 512  }
  0x39   : > { %1209 = vsyncadd (%p60_p1), [#allocation9], 4294966784  ;;  %v333_v0 = vld [vmem:[#allocation7 + $0x10] sm:$0xff]  ;;  %v334_v1 = vld [vmem:[#allocation7 + $0x18] sm:$0xff]  ;;  %s1242_s28 = smov 96   ;;  %vm336_vm0 = vcmask 261120   ;;  %v402_v23 = vlaneseq }
  0x3a   : > { %v995_v2 = vpack.i.bf16 %v333_v0, %v334_v1  ;;  %352 = vmatpush.msra.mxu0 %v334_v1  ;;  %v331_v3 = vld [vmem:[#allocation7] sm:$0xff]  ;;  %v332_v4 = vld [vmem:[#allocation7 + $0x8] sm:$0xff]  ;;  %v361_v13 = vld [vmem:[%s288_s22] sm:$0xff]  ;;  %vm409_vm1 = vcmask 64512   ;;  %s1243_s24 = smov 104   ;;  %s1244_s25 = smov 120  }
  0x3b   : > { %v1000_v5 = vpack.i.bf16 %v331_v3, %v332_v4  ;;  %v335_v6 = vld [vmem:[%s278_s2] sm:$0xff]  ;;  %s1245_s27 = smov 112   ;;  %v403_v24 = vshrl.u32 %v402_v23, 7  ;;  %v407_v25 = vand.u32 127, %v402_v23  ;;  %s1246_s30 = smov 88   ;;  %vm685_vm3 = vcmask 130048  }
  0x3c   : > { %996 = vrot.lane.b32.xlu0 %v995_v2, %s1242_s28  ;;  %353 = vmatpush.msra.mxu0 %v333_v0  ;;  %s1247_s7 = smov 80   ;;  %s1248_s9 = smov 72   ;;  %vm687_vm4 = vcmask 195584  }
  0x3d   : > { %vm408_vm2 = vcmp.le.s32.totalorder %v407_v25, %v403_v24  ;;  %s1249_s10 = smov 16   ;;  %s1250_s11 = smov 8   ;;  %v1005_v24 = vld [vmem:[%s1500_s4] ss:$0 sm:$0xff] }
  0x3e   : > { %354 = vmatpush.msra.mxu0 %v332_v4  ;;  %s1251_s12 = smov 24   ;;  %s892_s17 = sshll.u32 %s1228_s21, 3 }
  0x3f   : > { %s733_s8 = scalar_lea.hbm %s1501_s5, %s892_s17  ;;  %s330_s3 = scalar_lea.vmem [#allocation10], %s1385_s6 }
  0x40   : > { %355 = vmatpush.msra.mxu0 %v331_v3  ;;  %s735_s20 = sshll.u32 %s330_s3, 4  ;;  %s737_s22 = sshll.u32 %s733_s8, 4  ;;  %s736_s20 = int_to_ptr.vmem [resolvable:$true] %s735_s20  ;;  %s738_s22 = int_to_ptr.hbm [resolvable:$true] %s737_s22 }
  0x41   : > { %876 = vmatmul.msk.f32.vlgmr.msra.gmra.mxu0 %vm336_vm0, %v335_v6  ;;  %s1156_s21 = sshra.s32 %s738_s22, 4  ;;  %s1162_s6 = scalar_lea.hbm %s1501_s5, 16  ;;  %s1157_s21 = int_to_ptr.hbm [resolvable:$true] %s1156_s21 }
  0x42   : > { %p1163_p10 = scmp.lt.s32.totalorder %s1157_s21, %s1501_s5 }
  0x44   : > { %1001 = vrot.lane.b32.xlu0 %v1000_v5, %s1242_s28 }
  0xae   : > { %v997_v7 = vpop.permute.xlu0 %996 }
  0xaf   : > { %v998_v8 = vunpack.i.l.bf16 %v997_v7  ;;  %v999_v9 = vunpack.i.h.bf16 %v997_v7 }
  0xb1   : > { %393 = vmatpush.msra.mxu1 %v998_v8 }
  0xb3   : > { %394 = vmatpush.msra.mxu1 %v999_v9 }
  0xb6   : > { %v1002_v10 = vpop.permute.xlu0 %1001 }
  0xb7   : > { %v1003_v11 = vunpack.i.l.bf16 %v1002_v10  ;;  %v1004_v12 = vunpack.i.h.bf16 %v1002_v10 }
  0xb9   : > { %395 = vmatpush.msra.mxu1 %v1003_v11  ;;  %v692_v11 = vld [vmem:[#allocation8 + $0x18] sm:$0xff] }
  0xbb   : > { %396 = vmatpush.msra.mxu1 %v1004_v12  ;;  %v691_v12 = vld [vmem:[#allocation8 + $0x10] sm:$0xff] }
  0xbc   : > { %877 = vmatmul.msk.f32.vlgmr.msra.gmra.mxu1 %vm336_vm0, %v361_v13  ;;  %v690_v13 = vld [vmem:[#allocation8 + $0x8] sm:$0xff] }
  0xbe   : > { %v357_v14 = vpop.f32.mrf.mxu0 }
  0xbf   : > { %v360_v16 = vmul.f32 0.17677669, %v357_v14  ;;  %v689_v14 = vld [vmem:[#allocation8] sm:$0xff] }
 0x139   : > { %v1413_v15 = vpop.f32.mrf.mxu1 }
 0x13a   : > { %608 = vrot.lane.b32.xlu0 %v1413_v15, %s1243_s24  ;;  %476 = vrot.lane.b32.xlu2 %v1413_v15, %s1244_s25 }
 0x13b   : > { %878 = vmatpush.xpose.msk.msra.mxu2 %vm409_vm1, %v1413_v15 }
 0x13e   : > { %879 = vmatmul.msk.f32.vlgmr.msra.gmra.mxu2 %vm409_vm1, %v360_v16 }
 0x142   : > { %542 = vrot.lane.b32.xlu0 %v1413_v15, %s1245_s27  ;;  %474 = vrot.lane.b32.xlu2 %v360_v16, %s1244_s25 }
 0x14a   : > { %606 = vrot.lane.b32.xlu2 %v360_v16, %s1243_s24  ;;  %s1158_s24 = scalar_lea.hbm %s1157_s21, 8 }
 0x14b   : > { %p1159_p1 = scmp.ne.s32.totalorder %s1157_s21, %s1158_s24  ;;  %p1164_p11 = scmp.lt.s32.totalorder %s1162_s6, %s1158_s24 }
 0x14d   : > { %p1160_p3 = pnand %p1159_p1, %p1356_p2  ;;  %p1165_p12 = por %p1164_p11, %p1163_p10 }
 0x14f   : > { %p1161_p9 = pneg %p1160_p3 }
 0x151   : > { %p1166_p13 = pnand %p1165_p12, %p1161_p9 }
 0x152   : > { %540 = vrot.lane.b32.xlu2 %v360_v16, %s1245_s27 }
 0x194   : > { %v477_v17 = vpop.permute.xlu2 %476 }
 0x19c   : > { %v475_v18 = vpop.permute.xlu2 %474 }
 0x1a4   : > { %v607_v20 = vpop.permute.xlu2 %606 }
 0x1ac   : > { %v609_v19 = vpop.permute.xlu0 %608  ;;  %v541_v22 = vpop.permute.xlu2 %540 }
 0x1b4   : > { %v543_v21 = vpop.permute.xlu0 %542 }
 0x1b5   : > { %884 = vmatpush.xpose.msk.msrb.mxu0 %vm409_vm1, %v543_v21 }
 0x1b8   : > { %885 = vmatmul.msk.f32.vlgmr.msrb.gmra.mxu0 %vm409_vm1, %v541_v22 }
 0x1b9   : > { %712 = vmatpush.msra.mxu0 %v692_v11 }
 0x1bb   : > { %713 = vmatpush.msra.mxu0 %v691_v12 }
 0x1bd   : > { %714 = vmatpush.msra.mxu0 %v690_v13 }
 0x1bf   : > { %715 = vmatpush.msra.mxu0 %v689_v14 }
 0x1c1   : > { %v433_v26 = vpop.f32.mrf.mxu2 }
 0x1c2   : > { %v436_v27 = vsel %vm408_vm2, %v433_v26, -inf }
 0x1c3   : > { %v437_v28 = vsel %vm409_vm1, %v436_v27, -inf }
 0x1c4   : > { %438 = vmax.xlane.f32.xlu1 %v437_v28 }
 0x1dd   : > { %447 = vrot.lane.b32.xlu1 %v1413_v15, %s1242_s28  ;;  %s722_s28 = scalar_lea.sflag [#allocation4], %s1382_s16 }
 0x1e5   : > { %513 = vrot.lane.b32.xlu1 %v1413_v15, %s1246_s30 }
 0x235   : > { %v565_v29 = vpop.f32.mrf.mxu0 }
 0x236   : > { %v568_v30 = vsel %vm408_vm2, %v565_v29, -inf }
 0x237   : > { %v569_v31 = vsel %vm409_vm1, %v568_v30, -inf  ;;  %v439_v32 = vpop.xlane.xlu1 %438 }
 0x238   : > { %570 = vmax.xlane.f32.xlu1 %v569_v31  ;;  %v440_v33 = vsub.f32 %v436_v27, %v439_v32 }
 0x23a   : > { %v441_v34 = vmul.f32 1.442695, %v440_v33 }
 0x23c   : > { %1006 = vpow2.f32 %v441_v34 }
 0x242   : > { %v1007_v36 = vpop.eup %1006 }
 0x243   : > { %v443_v50 = vsel %vm409_vm1, %v1007_v36, 0.0 }
 0x24f   : > { %v448_v35 = vpop.permute.xlu1 %447 }
 0x250   : > { %468 = vmatpush.msra.mxu3 %v448_v35 }
 0x251   : > { %880 = vmatmul.msk.f32.vlgmr.msra.gmra.mxu3 %vm409_vm1, %v1007_v36 }
 0x252   : > { %881 = vmatpush.xpose.msk.msrb.mxu3 %vm409_vm1, %v477_v17 }
 0x256   : > { %887 = vmatpush.xpose.msk.msra.mxu3 %vm409_vm1, %v609_v19 }
 0x257   : > { %v514_v37 = vpop.permute.xlu1 %513 }
 0x258   : > { %534 = vmatpush.msrb.mxu2 %v514_v37 }
 0x259   : > { %882 = vmatmul.msk.f32.vlgmr.msrb.gmra.mxu3 %vm409_vm1, %v475_v18 }
 0x261   : > { %888 = vmatmul.msk.f32.vlgmr.msra.gmra.mxu3 %vm409_vm1, %v607_v20 }
 0x2ab   : > { %v571_v38 = vpop.xlane.xlu1 %570 }
 0x2ac   : > { %v572_v39 = vsub.f32 %v568_v30, %v571_v38 }
 0x2ae   : > { %v573_v40 = vmul.f32 1.442695, %v572_v39 }
 0x2b0   : > { %1008 = vpow2.f32 %v573_v40 }
 0x2b6   : > { %v1009_v41 = vpop.eup %1008 }
 0x2b7   : > { %v575_v42 = vsel %vm409_vm1, %v1009_v41, 0.0 }
 0x2b8   : > { %576 = vadd.xlane.f32.xlu1 %v575_v42 }
 0x2d4   : > { %v1436_v43 = vpop.f32.mrf.mxu3 }
 0x2dc   : > { %v499_v44 = vpop.f32.mrf.mxu3 }
 0x2dd   : > { %v502_v45 = vsel %vm408_vm2, %v499_v44, -inf }
 0x2de   : > { %v503_v46 = vsel %vm409_vm1, %v502_v45, -inf }
 0x2df   : > { %504 = vmax.xlane.f32.xlu0 %v503_v46 }
 0x2e4   : > { %v631_v47 = vpop.f32.mrf.mxu3 }
 0x2e5   : > { %v634_v48 = vsel %vm408_vm2, %v631_v47, -inf }
 0x2e6   : > { %v635_v49 = vsel %vm409_vm1, %v634_v48, -inf }
 0x2e7   : > { %636 = vmax.xlane.f32.xlu2 %v635_v49 }
 0x2f3   : > { %579 = vrot.lane.b32.xlu0 %v1413_v15, %s1247_s7 }
 0x2ff   : > { %645 = vrot.lane.b32.xlu2 %v1413_v15, %s1248_s9 }
 0x328   : > { %444 = vadd.xlane.f32.xlu2 %v443_v50 }
 0x32b   : > { %v577_v63 = vpop.xlane.xlu1 %576 }
 0x352   : > { %v505_v51 = vpop.xlane.xlu0 %504 }
 0x353   : > { %v506_v52 = vsub.f32 %v502_v45, %v505_v51 }
 0x355   : > { %v507_v53 = vmul.f32 1.442695, %v506_v52 }
 0x357   : > { %1010 = vpow2.f32 %v507_v53 }
 0x35a   : > { %v637_v54 = vpop.xlane.xlu2 %636 }
 0x35b   : > { %v638_v55 = vsub.f32 %v634_v48, %v637_v54 }
 0x35d   : > { %v1011_v56 = vpop.eup %1010  ;;  %v639_v57 = vmul.f32 1.442695, %v638_v55 }
 0x35e   : > { %883 = vmatmul.msk.f32.vlgmr.msrb.gmra.mxu2 %vm409_vm1, %v1011_v56  ;;  %v509_v58 = vsel %vm409_vm1, %v1011_v56, 0.0 }
 0x35f   : > { %1012 = vpow2.f32 %v639_v57  ;;  %510 = vadd.xlane.f32.xlu1 %v509_v58 }
 0x360   : > { %1014 = vrcp.f32 %v577_v63 }
 0x362   : > { %v646_v59 = vpop.permute.xlu2 %645 }
 0x363   : > { %666 = vmatpush.msra.mxu2 %v646_v59 }
 0x365   : > { %v1013_v60 = vpop.eup %1012  ;;  %v580_v61 = vpop.permute.xlu0 %579 }
 0x366   : > { %600 = vmatpush.msrb.mxu1 %v580_v61  ;;  %889 = vmatmul.msk.f32.vlgmr.msra.gmra.mxu2 %vm409_vm1, %v1013_v60  ;;  %v641_v62 = vsel %vm409_vm1, %v1013_v60, 0.0  ;;  %v1015_v1 = vpop.eup %1014 }
 0x367   : > { %642 = vadd.xlane.f32.xlu0 %v641_v62  ;;  %886 = vmatmul.msk.f32.vlgmr.msrb.gmra.mxu1 %vm409_vm1, %v1009_v41 }
 0x39b   : > { %v445_v15 = vpop.xlane.xlu2 %444 }
 0x3d2   : > { %v511_v0 = vpop.xlane.xlu1 %510 }
 0x3d3   : > { %1016 = vrcp.f32 %v511_v0 }
 0x3d9   : > { %v1017_v6 = vpop.eup %1016 }
 0x3da   : > { %v643_v5 = vpop.xlane.xlu0 %642 }
 0x3db   : > { %1018 = vrcp.f32 %v643_v5 }
 0x3dc   : > { %1020 = vrcp.f32 %v445_v15 }
 0x3e1   : > { %v536_v4 = vpop.f32.mrf.mxu2  ;;  %v1019_v9 = vpop.eup %1018 }
 0x3e2   : > { %v539_v7 = vmul.f32 %v1017_v6, %v536_v4  ;;  %v1021_v17 = vpop.eup %1020 }
 0x3e3   : > { %v473_v19 = vmul.f32 %v1021_v17, %v1436_v43 }
 0x3e4   : > { %v602_v2 = vpop.f32.mrf.mxu1 }
 0x3e5   : > { %v605_v3 = vmul.f32 %v1015_v1, %v602_v2 }
 0x3e7   : > { %677 = vrot.lane.b32.xlu1 %v605_v3, %s1249_s10 }
 0x3e9   : > { %v668_v8 = vpop.f32.mrf.mxu2 }
 0x3ea   : > { %v671_v10 = vmul.f32 %v1019_v9, %v668_v8 }
 0x3ef   : > { %673 = vrot.lane.b32.xlu1 %v539_v7, %s1250_s11 }
 0x3f7   : > { %681 = vrot.lane.b32.xlu1 %v671_v10, %s1251_s12 }
 0x459   : > { %v678_v16 = vpop.permute.xlu1 %677 }
 0x461   : > { %v674_v18 = vpop.permute.xlu1 %673 }
 0x462   : > { %v684_v20 = vsel %vm409_vm1, %v473_v19, %v674_v18 }
 0x463   : > { %v686_v21 = vsel %vm685_vm3, %v684_v20, %v678_v16 }
 0x469   : > { %v682_v22 = vpop.permute.xlu1 %681 }
 0x46a   : > { %v688_v23 = vsel %vm687_vm4, %v686_v21, %v682_v22 }
 0x46b   : > { %890 = vmatmul.msk.f32.vlgmr.msra.gmra.mxu0 %vm336_vm0, %v688_v23 }
 0x4e8   : > { %v717_v25 = vpop.f32.mrf.mxu0 }
 0x4e9   : > { %v718_v26 = vadd.f32 %v1005_v24, %v717_v25 }
 0x4eb   : > { %720 = vst.msk [vmem:[%s330_s3] sm:$0xff] %vm336_vm0, %v718_v26 }
 0x4ec   : > { %1169 = shalt.err (!%p1166_p13)
}
 0x4ed   : > { %907 = dma.vmem_to_hbm [thread:$0]  (%p1356_p2), %s736_s20, 128, %s738_s22, %s722_s28  }
 0x4ee PF: > { %s749_s16 = sand.u32 1, %s1216_s18   ;;  %p924_p0 = pnand %p865_p6, %p1363_p5 }
 0x4ef   : > { %s750_s9 = scalar_lea.sflag [#allocation4], %s749_s16 }
 0x4f0   : > { %p925_p4 = pneg %p924_p0 }
 0x4f2   : > { %1211 = dma.done.wait (%p925_p4), %s750_s9, 128  }
 0x4f3   : > { %1213 = vsyncadd (%p925_p4), %s750_s9, 4294967168  ;;  %s25_s23 = sadd.s32 1, %s1236_s23   ;;  %s1518_s10 = sld [smem:[#allocation16_spill]] }
 0x4f4   : > { %p22_p7 = scmp.ge.s32.totalorder %s25_s23, 4   ;;  %s1519_s20 = sld [smem:[#allocation19_spill]] }
 0x4f5   : > { %s1520_s21 = sld [smem:[#allocation17_spill]]  ;;  %s1522_s18 = smov %s1220_s19 }
 0x4f6   : > { %s1521_s22 = sld [smem:[#allocation18_spill]]  ;;  %24 = sbr.rel (!%p22_p7) target bundleno = 12 (0xc), region = 106 }
 0x4f9   : > { %s1523_s19 = smov %s1518_s10 }
 0x4fb   :  { %756 = vsyncpa [#allocation3], 1 }
 0x4fc   :  { %758 = vsyncpa [#allocation3 + $0x1], 1 }
 0x4fd   :  { %759 = vsyncpa [#allocation6], 1 }
 0x4fe   :  { %761 = vsyncpa [#allocation6 + $0x1], 1 }
 0x4ff   :  { %762 = vsyncpa [#allocation9], 1 }
 0x500   :  { %763 = vsyncpa [#allocation4], 1 }
 0x501   :  { %765 = vsyncpa [#allocation4 + $0x1], 1 }

</bundles_post_ra>
